<compile_context>
chip_gen: v5e
topology: v5e:2x2
jax: 0.10.0
libtpu: 0.0.40
codegen_flags: <defaults>
</compile_context>

<pallas_src>
import jax
import jax.numpy as jnp
from jax.experimental import pallas as pl
from jax.experimental.pallas import tpu as pltpu

_SUBLANE = 8


def _round_up(v, m):
    return (v + m - 1) // m * m


def dqn_kernel(x_ref, w1_ref, b1_ref, w2_ref, b2_ref, w3_ref, b3_ref, o_ref):
    """One batch tile: relu(relu(x@W1+b1)@W2+b2)@W3+b3.

    Matmuls run on the MXU in the weights' dtype (bf16) with f32
    accumulation; bias add + ReLU stays in f32.  Narrow K=n_in / N=n_act
    matmuls are left to Mosaic (padding lives only in vregs).
    """
    x = x_ref[...].astype(w1_ref.dtype)  # f32 -> bf16 cast inside the kernel
    h1 = jnp.dot(x, w1_ref[...], preferred_element_type=jnp.float32)
    h1 = jnp.maximum(h1 + b1_ref[...], 0.0)
    h2 = jnp.dot(h1.astype(w2_ref.dtype), w2_ref[...],
                 preferred_element_type=jnp.float32)
    h2 = jnp.maximum(h2 + b2_ref[...], 0.0)
    out = jnp.dot(h2.astype(w3_ref.dtype), w3_ref[...],
                  preferred_element_type=jnp.float32)
    o_ref[...] = (out + b3_ref[...]).astype(o_ref.dtype)


def prepare_dqn_params(params, compute_dtype=jnp.bfloat16):
    """One-time parameter prep (call once and cache the result).

    Casts weights to the MXU compute dtype and biases to f32 row vectors so
    dqn_forward does no per-call casting/padding passes.
    TODO(synk): for inference-only use, int8 weights are a further 2x cut on
    v5e/v6e (v7x MXU is fp8-only, so don't assume int8 carries over).
    """
    cd = jnp.dtype(compute_dtype)
    return {
        "w1": params["w1"].astype(cd),
        "w2": params["w2"].astype(cd),
        "w3": params["w3"].astype(cd),
        "b1": params["b1"].reshape(1, -1).astype(jnp.float32),
        "b2": params["b2"].reshape(1, -1).astype(jnp.float32),
        "b3": params["b3"].reshape(1, -1).astype(jnp.float32),
    }


def dqn_forward(x, prepared, *, batch_tile=4096):
    """x: (B, n_input) float32. prepared: output of prepare_dqn_params.

    Weights are stored (in_features, out_features) so the kernel computes
    y = x @ W + b (the nn.Linear transpose lives in parameter setup).
    """
    w1, b1 = prepared["w1"], prepared["b1"]
    w2, b2 = prepared["w2"], prepared["b2"]
    w3, b3 = prepared["w3"], prepared["b3"]

    B, n_in = x.shape
    hidden = w1.shape[1]
    n_act = w3.shape[1]

    # Batch tiling: bt multiple of 8 with bounded overshoot (< 8*n_tiles
    # rows); when the batch is splittable, force >= 2 grid tiles so v7x's
    # two TensorCores both get work via the "parallel" batch axis.
    n_tiles = max(1, pl.cdiv(B, batch_tile))
    if B >= 2 * _SUBLANE:
        n_tiles = max(n_tiles, 2)
    bt = _round_up(pl.cdiv(B, n_tiles), _SUBLANE)
    B_p = n_tiles * bt

    x_dtype = jnp.dtype(x.dtype)
    cd = jnp.dtype(w1.dtype)

    # Pad only the batch (rows); feature dims keep their true narrow widths
    # in HBM — lane padding happens only inside VMEM/vregs.
    x_in = x if B_p == B else jnp.zeros((B_p, n_in), x_dtype).at[:B, :].set(x)

    flops = 2 * B_p * (n_in * hidden + hidden * hidden + hidden * n_act)
    bytes_accessed = (x_in.size * x_dtype.itemsize
                      + (w1.size + w2.size + w3.size) * cd.itemsize
                      + (b1.size + b2.size + b3.size) * 4
                      + B_p * n_act * 4)
    cost = pl.CostEstimate(flops=flops, transcendentals=0,
                           bytes_accessed=bytes_accessed)

    # VMEM budget: resident weights/biases + double-buffered narrow x/out
    # tiles + f32 (bt, hidden) intermediates, 2x headroom, capped at 32 MiB
    # (v7x has 64 MiB VMEM per TensorCore).
    vmem_need = ((w1.size + w2.size + w3.size) * cd.itemsize
                 + (b1.size + b2.size + b3.size) * 4
                 + 2 * bt * (n_in * x_dtype.itemsize + n_act * 4)
                 + 3 * bt * hidden * 4)
    vmem_limit = int(min(max(2 * vmem_need, 16 * 1024 * 1024),
                         32 * 1024 * 1024))

    out_p = pl.pallas_call(
        dqn_kernel,
        out_shape=jax.ShapeDtypeStruct((B_p, n_act), jnp.float32),
        grid=(n_tiles,),
        in_specs=[
            pl.BlockSpec((bt, n_in), lambda i: (i, 0)),        # x tile (narrow)
            pl.BlockSpec((n_in, hidden), lambda i: (0, 0)),    # w1 (resident)
            pl.BlockSpec((1, hidden), lambda i: (0, 0)),       # b1 (resident)
            pl.BlockSpec((hidden, hidden), lambda i: (0, 0)),  # w2 (resident)
            pl.BlockSpec((1, hidden), lambda i: (0, 0)),       # b2 (resident)
            pl.BlockSpec((hidden, n_act), lambda i: (0, 0)),   # w3 (resident)
            pl.BlockSpec((1, n_act), lambda i: (0, 0)),        # b3 (resident)
        ],
        out_specs=pl.BlockSpec((bt, n_act), lambda i: (i, 0)),
        compiler_params=pltpu.CompilerParams(
            dimension_semantics=("parallel",),
            vmem_limit_bytes=vmem_limit),
        cost_estimate=cost,
    )(x_in, w1, b1, w2, b2, w3, b3)

    return out_p[:B] if B_p != B else out_p


def init_dqn_params(key, n_input, n_actions, hidden=128):
    """Deterministic init mimicking nn.Linear default: U(-1/sqrt(fan_in), +)."""
    def linear(key, fan_in, fan_out):
        kw, kb = jax.random.split(key)
        bound = 1.0 / jnp.sqrt(fan_in)
        # stored as (in, out) for the kernel (transpose of PyTorch layout)
        w = jax.random.uniform(kw, (fan_in, fan_out), jnp.float32, -bound, bound)
        b = jax.random.uniform(kb, (1, fan_out), jnp.float32, -bound, bound)
        return w, b

    k1, k2, k3 = jax.random.split(key, 3)
    w1, b1 = linear(k1, n_input, hidden)
    w2, b2 = linear(k2, hidden, hidden)
    w3, b3 = linear(k3, hidden, n_actions)
    return {"w1": w1, "b1": b1, "w2": w2, "b2": b2, "w3": w3, "b3": b3}


def dqn_reference(x, p, compute_dtype=jnp.bfloat16):
    """Pure-JAX reference mirroring the kernel's dtype recipe."""
    cd = compute_dtype
    h1 = jnp.maximum(
        jnp.dot(x.astype(cd), p["w1"].astype(cd),
                preferred_element_type=jnp.float32) + p["b1"], 0.0)
    h2 = jnp.maximum(
        jnp.dot(h1.astype(cd), p["w2"].astype(cd),
                preferred_element_type=jnp.float32) + p["b2"], 0.0)
    return jnp.dot(h2.astype(cd), p["w3"].astype(cd),
                   preferred_element_type=jnp.float32) + p["b3"]


if __name__ == "__main__":
    key = jax.random.PRNGKey(0)
    kx, kp = jax.random.split(key)

    n_input, n_actions, batch = 2, 2, 8
    x = jax.random.normal(kx, (batch, n_input), dtype=jnp.float32)
    params = init_dqn_params(kp, n_input, n_actions)
    prepared = prepare_dqn_params(params)   # one-time weight prep (cache this)

    out = dqn_forward(x, prepared)
    out = jax.block_until_ready(out)

    ref = dqn_reference(x, params, compute_dtype=jnp.bfloat16)
    assert out.shape == (batch, n_actions), out.shape
    assert jnp.allclose(out, ref, atol=1e-2, rtol=1e-2), "mismatch vs reference"

    print("KERNEL_OK")
</pallas_src>

<mosaic_0001>
module attributes {stable_mosaic.version = 11 : i64} {
  func.func @dqn_kernel(%arg0: i32, %arg1: memref<8x2xf32, #tpu.memory_space<vmem>>, %arg2: memref<2x128xbf16, #tpu.memory_space<vmem>>, %arg3: memref<1x128xf32, #tpu.memory_space<vmem>>, %arg4: memref<128x128xbf16, #tpu.memory_space<vmem>>, %arg5: memref<1x128xf32, #tpu.memory_space<vmem>>, %arg6: memref<128x2xbf16, #tpu.memory_space<vmem>>, %arg7: memref<1x2xf32, #tpu.memory_space<vmem>>, %arg8: memref<8x2xf32, #tpu.memory_space<vmem>>) attributes {dimension_semantics = [#tpu.dimension_semantics<parallel>], iteration_bounds = array<i64: 1>, scalar_prefetch = 0 : i64, scratch_operands = 0 : i64, tpu.core_type = #tpu.core_type<tc>, window_params = [{transform_indices = @transform_0, window_bounds = array<i64: 8, 2>}, {pipeline_mode = #tpu.pipeline_mode<synchronous>, transform_indices = @transform_1, window_bounds = array<i64: 2, 128>}, {pipeline_mode = #tpu.pipeline_mode<synchronous>, transform_indices = @transform_2, window_bounds = array<i64: 1, 128>}, {pipeline_mode = #tpu.pipeline_mode<synchronous>, transform_indices = @transform_3, window_bounds = array<i64: 128, 128>}, {pipeline_mode = #tpu.pipeline_mode<synchronous>, transform_indices = @transform_4, window_bounds = array<i64: 1, 128>}, {pipeline_mode = #tpu.pipeline_mode<synchronous>, transform_indices = @transform_5, window_bounds = array<i64: 128, 2>}, {pipeline_mode = #tpu.pipeline_mode<synchronous>, transform_indices = @transform_6, window_bounds = array<i64: 1, 2>}, {transform_indices = @transform_7, window_bounds = array<i64: 8, 2>}]} {
    %c0 = arith.constant 0 : index
    %c0_0 = arith.constant 0 : index
    %0 = vector.load %arg1[%c0, %c0_0] : memref<8x2xf32, #tpu.memory_space<vmem>>, vector<8x2xf32>
    %1 = arith.truncf %0 : vector<8x2xf32> to vector<8x2xbf16>
    %c0_1 = arith.constant 0 : index
    %c0_2 = arith.constant 0 : index
    %2 = vector.load %arg2[%c0_1, %c0_2] : memref<2x128xbf16, #tpu.memory_space<vmem>>, vector<2x128xbf16>
    %cst = arith.constant dense<0.000000e+00> : vector<8x128xf32>
    %3 = tpu.matmul %1, %2, %cst {dimension_numbers = #tpu.dot_dimension_numbers<[1], [0], [0], [1], [0, 0, 1, 1], [], []>} : vector<8x2xbf16>, vector<2x128xbf16>, vector<8x128xf32> -> vector<8x128xf32>
    %c0_3 = arith.constant 0 : index
    %c0_4 = arith.constant 0 : index
    %4 = vector.load %arg3[%c0_3, %c0_4] : memref<1x128xf32, #tpu.memory_space<vmem>>, vector<1x128xf32>
    %5 = vector.broadcast %4 : vector<1x128xf32> to vector<8x128xf32>
    %6 = arith.addf %3, %5 : vector<8x128xf32>
    %cst_5 = arith.constant 0.000000e+00 : f32
    %7 = vector.broadcast %cst_5 : f32 to vector<8x128xf32>
    %8 = arith.maximumf %6, %7 : vector<8x128xf32>
    %9 = arith.truncf %8 : vector<8x128xf32> to vector<8x128xbf16>
    %c0_6 = arith.constant 0 : index
    %c0_7 = arith.constant 0 : index
    %10 = vector.load %arg4[%c0_6, %c0_7] : memref<128x128xbf16, #tpu.memory_space<vmem>>, vector<128x128xbf16>
    %cst_8 = arith.constant dense<0.000000e+00> : vector<8x128xf32>
    %11 = tpu.matmul %9, %10, %cst_8 {dimension_numbers = #tpu.dot_dimension_numbers<[1], [0], [0], [1], [0, 0, 1, 1], [], []>} : vector<8x128xbf16>, vector<128x128xbf16>, vector<8x128xf32> -> vector<8x128xf32>
    %c0_9 = arith.constant 0 : index
    %c0_10 = arith.constant 0 : index
    %12 = vector.load %arg5[%c0_9, %c0_10] : memref<1x128xf32, #tpu.memory_space<vmem>>, vector<1x128xf32>
    %13 = vector.broadcast %12 : vector<1x128xf32> to vector<8x128xf32>
    %14 = arith.addf %11, %13 : vector<8x128xf32>
    %cst_11 = arith.constant 0.000000e+00 : f32
    %15 = vector.broadcast %cst_11 : f32 to vector<8x128xf32>
    %16 = arith.maximumf %14, %15 : vector<8x128xf32>
    %17 = arith.truncf %16 : vector<8x128xf32> to vector<8x128xbf16>
    %c0_12 = arith.constant 0 : index
    %c0_13 = arith.constant 0 : index
    %18 = vector.load %arg6[%c0_12, %c0_13] : memref<128x2xbf16, #tpu.memory_space<vmem>>, vector<128x2xbf16>
    %cst_14 = arith.constant dense<0.000000e+00> : vector<8x2xf32>
    %19 = tpu.matmul %17, %18, %cst_14 {dimension_numbers = #tpu.dot_dimension_numbers<[1], [0], [0], [1], [0, 0, 1, 1], [], []>} : vector<8x128xbf16>, vector<128x2xbf16>, vector<8x2xf32> -> vector<8x2xf32>
    %c0_15 = arith.constant 0 : index
    %c0_16 = arith.constant 0 : index
    %20 = vector.load %arg7[%c0_15, %c0_16] : memref<1x2xf32, #tpu.memory_space<vmem>>, vector<1x2xf32>
    %21 = vector.broadcast %20 : vector<1x2xf32> to vector<8x2xf32>
    %22 = arith.addf %19, %21 : vector<8x2xf32>
    %c0_17 = arith.constant 0 : index
    %c0_18 = arith.constant 0 : index
    %23 = vector.load %arg8[%c0_17, %c0_18] : memref<8x2xf32, #tpu.memory_space<vmem>>, vector<8x2xf32>
    tpu.vector_store %arg8[%c0_17, %c0_18], %22 {strides = array<i32>} : memref<8x2xf32, #tpu.memory_space<vmem>>, vector<8x2xf32>,
    return
  }
  func.func @transform_0(%arg0: i32) -> (i32, i32) {
    %c0_i32 = arith.constant 0 : i32
    %c0_i32_0 = arith.constant 0 : i32
    return %arg0, %c0_i32 : i32, i32
  }
  func.func @transform_1(%arg0: i32) -> (i32, i32) {
    %c0_i32 = arith.constant 0 : i32
    %c0_i32_0 = arith.constant 0 : i32
    %c0_i32_1 = arith.constant 0 : i32
    return %c0_i32, %c0_i32_0 : i32, i32
  }
  func.func @transform_2(%arg0: i32) -> (i32, i32) {
    %c0_i32 = arith.constant 0 : i32
    %c0_i32_0 = arith.constant 0 : i32
    %c0_i32_1 = arith.constant 0 : i32
    return %c0_i32, %c0_i32_0 : i32, i32
  }
  func.func @transform_3(%arg0: i32) -> (i32, i32) {
    %c0_i32 = arith.constant 0 : i32
    %c0_i32_0 = arith.constant 0 : i32
    %c0_i32_1 = arith.constant 0 : i32
    return %c0_i32, %c0_i32_0 : i32, i32
  }
  func.func @transform_4(%arg0: i32) -> (i32, i32) {
    %c0_i32 = arith.constant 0 : i32
    %c0_i32_0 = arith.constant 0 : i32
    %c0_i32_1 = arith.constant 0 : i32
    return %c0_i32, %c0_i32_0 : i32, i32
  }
  func.func @transform_5(%arg0: i32) -> (i32, i32) {
    %c0_i32 = arith.constant 0 : i32
    %c0_i32_0 = arith.constant 0 : i32
    %c0_i32_1 = arith.constant 0 : i32
    return %c0_i32, %c0_i32_0 : i32, i32
  }
  func.func @transform_6(%arg0: i32) -> (i32, i32) {
    %c0_i32 = arith.constant 0 : i32
    %c0_i32_0 = arith.constant 0 : i32
    %c0_i32_1 = arith.constant 0 : i32
    return %c0_i32, %c0_i32_0 : i32, i32
  }
  func.func @transform_7(%arg0: i32) -> (i32, i32) {
    %c0_i32 = arith.constant 0 : i32
    %c0_i32_0 = arith.constant 0 : i32
    return %arg0, %c0_i32 : i32, i32
  }
}

</mosaic_0001>

<bundles_post_ra>
// kernel: tpu_custom_call.1
= control target key start
LH: loop header
LB: loop body
LE: loop exit
PB: predicated region body
PF: predicated region fallthrough
CT: control target
= control target key end

     0   :  { %vm38_vm0 = vcmask 1040384   ;;  %vm34_vm1 = vcmask 15360   ;;  %s418_s1 = inlined_call_operand.vmem [shape: bf16[2,128], index: 1, kind: input, shape index: {}]   ;;  %s419_s0 = inlined_call_operand.vmem [shape: f32[8,2], index: 0, kind: input, shape index: {}]   ;;  %s420_s3 = inlined_call_operand.vmem [shape: bf16[128,128], index: 3, kind: input, shape index: {}]   ;;  %s421_s2 = inlined_call_operand.vmem [shape: f32[1,128], index: 2, kind: input, shape index: {}]   ;;  %s422_s4 = inlined_call_operand.vmem [shape: f32[1,128], index: 4, kind: input, shape index: {}]   ;;  %s423_s5 = inlined_call_operand.vmem [shape: bf16[128,2], index: 5, kind: input, shape index: {}]   ;;  %s424_s6 = inlined_call_operand.vmem [shape: f32[1,2], index: 6, kind: input, shape index: {}]   ;;  %s425_s7 = inlined_call_operand.vmem [shape: f32[8,2], index: 7, kind: output, shape index: {}]  }
   0x1   :  { %v29_v0 = vld [vmem:[%s418_s1] sm:$0x1]  ;;  %v298_v2 = vld [vmem:[%s420_s3 + $0x38] sm:$0xff]  ;;  %v297_v5 = vld [vmem:[%s420_s3 + $0x30] sm:$0xff] }
   0x2   :  { %v27_v1 = vld [vmem:[%s419_s0] sm:$0xff]  ;;  %v40_v3 = vsel %vm38_vm0, %v29_v0, 0  ;;  %125 = vmatpush.bf16.msra.mxu1 %v298_v2  ;;  %v296_v6 = vld [vmem:[%s420_s3 + $0x28] sm:$0xff]  ;;  %v294_v8 = vld [vmem:[%s420_s3 + $0x18] sm:$0xff] }
   0x3   :  { %v28_v4 = vpack.c.bf16 %v27_v1, %v27_v1  ;;  %49 = vmatpush.bf16.msra.mxu0 %v40_v3  ;;  %v295_v7 = vld [vmem:[%s420_s3 + $0x20] sm:$0xff]  ;;  %v293_v9 = vld [vmem:[%s420_s3 + $0x10] sm:$0xff]  ;;  %v292_v10 = vld [vmem:[%s420_s3 + $0x8] sm:$0xff] }
   0x4   :  { %v291_v11 = vld [vmem:[%s420_s3] sm:$0xff]  ;;  %v306_v12 = vld [vmem:[%s423_s5 + $0x38] sm:$0xff]  ;;  %v305_v13 = vld [vmem:[%s423_s5 + $0x30] sm:$0xff] }
   0x5   :  { %208 = vmatpush.bf16.msra.mxu2 %v306_v12  ;;  %v304_v14 = vld [vmem:[%s423_s5 + $0x28] sm:$0xff]  ;;  %v303_v15 = vld [vmem:[%s423_s5 + $0x20] sm:$0xff]  ;;  %v302_v16 = vld [vmem:[%s423_s5 + $0x18] sm:$0xff] }
   0x6   :  { %226 = vmatmul.msk.bf16.vlgmr.msra.gmra.mxu0 %vm34_vm1, %v28_v4  ;;  %126 = vmatpush.bf16.msra.mxu1 %v297_v5  ;;  %v301_v17 = vld [vmem:[%s423_s5 + $0x10] sm:$0xff]  ;;  %v307_v18 = vld [vmem:[%s421_s2] ss:$0 sm:$0xff]  ;;  %v300_v24 = vld [vmem:[%s423_s5 + $0x8] sm:$0xff] }
   0x7   :  { %v299_v25 = vld [vmem:[%s423_s5] sm:$0xff] }
   0x8   :  { %v308_v26 = vld [vmem:[%s422_s4] ss:$0 sm:$0xff] }
   0x9   :  { %209 = vmatpush.bf16.msra.mxu2 %v305_v13  ;;  %v309_v32 = vld [vmem:[%s424_s6] ss:$0 sm:$0xff] }
   0xa   :  { %127 = vmatpush.bf16.msra.mxu1 %v296_v6 }
   0xd   :  { %210 = vmatpush.bf16.msra.mxu2 %v304_v14 }
   0xe   :  { %128 = vmatpush.bf16.msra.mxu1 %v295_v7 }
  0x11   :  { %211 = vmatpush.bf16.msra.mxu2 %v303_v15 }
  0x12   :  { %129 = vmatpush.bf16.msra.mxu1 %v294_v8 }
  0x15   :  { %212 = vmatpush.bf16.msra.mxu2 %v302_v16 }
  0x16   :  { %130 = vmatpush.bf16.msra.mxu1 %v293_v9 }
  0x19   :  { %213 = vmatpush.bf16.msra.mxu2 %v301_v17 }
  0x1a   :  { %131 = vmatpush.bf16.msra.mxu1 %v292_v10 }
  0x1d   :  { %214 = vmatpush.bf16.msra.mxu2 %v300_v24 }
  0x1e   :  { %132 = vmatpush.bf16.msra.mxu1 %v291_v11 }
  0x21   :  { %215 = vmatpush.bf16.msra.mxu2 %v299_v25 }
  0x83   :  { %v51_v19 = vpop.f32.mrf.mxu0 }
  0x84   :  { %v52_v20 = vadd.f32 %v307_v18, %v51_v19 }
  0x86   :  { %v55_v21 = vmax.f32 %v52_v20, 0.0 }
  0x88   :  { %v56_v22 = vpack.c.bf16 %v55_v21, %v55_v21 }
  0x8a   :  { %133 = vmatmul.bf16.vlgmr.msra.gmra.mxu1 %v56_v22 }
  0x8b   :  { %v53_v23 = vpop.f32.mrf.mxu0 }
 0x107   :  { %v134_v27 = vpop.f32.mrf.mxu1 }
 0x108   :  { %v135_v28 = vadd.f32 %v308_v26, %v134_v27 }
 0x10a   :  { %v138_v29 = vmax.f32 %v135_v28, 0.0 }
 0x10c   :  { %v139_v30 = vpack.c.bf16 %v138_v29, %v138_v29 }
 0x10e   :  { %216 = vmatmul.bf16.vlgmr.msra.gmra.mxu2 %v139_v30 }
 0x10f   :  { %v136_v31 = vpop.f32.mrf.mxu1 }
 0x191   :  { %v217_v33 = vpop.f32.mrf.mxu2 }
 0x192   :  { %v218_v34 = vadd.f32 %v309_v32, %v217_v33 }
 0x194   :  { %221 = vst.msk [vmem:[%s425_s7] sm:$0xff] %vm34_vm1, %v218_v34 }
 0x199   :  { %v219_v35 = vpop.f32.mrf.mxu2 }

</bundles_post_ra>
